<compile_context>
chip_gen: v6e
topology: v6e:2x2x1
jax: 0.10.0
libtpu: 0.0.40
codegen_flags: <defaults>
</compile_context>

<pallas_src>
import jax
import jax.numpy as jnp
import numpy as np
from jax import lax
from jax.experimental import pallas as pl
from jax.experimental.pallas import tpu as pltpu

VOCAB = 64
D_MODEL = 128     # multiple of 128 -> lane-dense blocks / unmasked stores
MAX_LEN = 128
BATCH = 2
SEQ = 128         # == D_MODEL == MAX_LEN so the literal encoding[:, :seq_len] broadcast works
DROP_PROB = 0.1   # kept for fidelity; identity in eval mode
TILE_N = 128      # flattened tokens per grid step (must divide SEQ)


def full_embedding_kernel(ids_ref, table_hbm, pos_ref, out_ref, gather_buf, copy_sems):
    """One grid step = TILE_N flattened tokens: DMA row-gather + positional add + store.

    ids_ref   : (B*S,)      int32  SMEM  (scalar-prefetched flattened token ids)
    table_hbm : (V, D)      f32    HBM   (nn.Embedding weight; never copied whole to VMEM)
    pos_ref   : (TILE_N, D) f32    VMEM  (positional block; VMEM-resident when TILE_N == S)
    out_ref   : (TILE_N, D) f32    VMEM
    gather_buf: (TILE_N, D) f32    VMEM scratch (row-gather landing buffer)
    copy_sems : (TILE_N,)   DMA semaphores
    """
    n_rows = out_ref.shape[0]
    base = pl.program_id(0) * n_rows

    # Issue all row DMAs for this tile, then drain — the copies overlap each other.
    def issue(r, carry):
        tok = ids_ref[base + r]
        pltpu.make_async_copy(
            table_hbm.at[pl.ds(tok, 1), :],
            gather_buf.at[pl.ds(r, 1), :],
            copy_sems.at[r],
        ).start()
        return carry

    lax.fori_loop(0, n_rows, issue, 0)

    def drain(r, carry):
        pltpu.make_async_copy(
            table_hbm.at[pl.ds(0, 1), :],      # dummy src slice of matching shape for wait
            gather_buf.at[pl.ds(r, 1), :],
            copy_sems.at[r],
        ).wait()
        return carry

    lax.fori_loop(0, n_rows, drain, 0)

    # Dropout is identity in eval mode (see TODO at top for training mode).
    out_ref[...] = gather_buf[...] + pos_ref[...]


def make_position_encoding(max_len: int, d_model: int) -> jnp.ndarray:
    """Builds the PositionEmbedding buffer exactly as the PyTorch __init__ does."""
    pos = jnp.arange(max_len, dtype=jnp.float32)[:, None]                    # (max_len, 1)
    freq_idx = jnp.arange(0, d_model, 2, dtype=jnp.float32)                  # (d_model//2,)
    # NOTE: floor-division reproduced from the original (`// d_model`), so this is all ones.
    frequencies = (1.0 / jnp.power(10000.0, jnp.floor_divide(freq_idx, float(d_model))))[None, :]
    enc = jnp.zeros((max_len, d_model), dtype=jnp.float32)
    enc = enc.at[:, 0::2].set(jnp.sin(pos * frequencies))
    enc = enc.at[:, 1::2].set(jnp.cos(pos * frequencies))
    return enc


def full_embedding(ids: jnp.ndarray, table: jnp.ndarray, encoding: jnp.ndarray,
                   *, tile_n: int = TILE_N) -> jnp.ndarray:
    B, S = ids.shape
    V, D = table.shape
    # Literal reproduction of PositionEmbedding.forward: slice along dim 1 (d_model axis).
    pos = encoding[:, :S]
    # Guard the PyTorch broadcast quirk: (B, S, D) + (MAX_LEN, S) is only legal when
    # MAX_LEN == S and S == D (exactly as it would be in PyTorch).
    assert pos.shape == (S, D), "literal encoding[:, :S] broadcast needs S == D == MAX_LEN"
    assert S % tile_n == 0, "tile_n must divide the sequence length"

    n_tokens = B * S
    num_tiles = n_tokens // tile_n
    s_blocks = S // tile_n

    # Clamp ids so an out-of-range token can never drive an out-of-bounds HBM DMA.
    # (PyTorch nn.Embedding would raise instead; valid inputs are unaffected.)
    ids_flat = jnp.clip(ids.reshape(n_tokens).astype(jnp.int32), 0, V - 1)

    # Positional block index_map: tile j of flattened tokens covers sequence positions
    # (j % s_blocks)*tile_n : ... ; when s_blocks == 1 the block index is constant and
    # Pallas keeps the block VMEM-resident across all grid steps.
    if s_blocks == 1:
        pos_index_map = lambda j, ids_sref: (0, 0)
    else:
        pos_index_map = lambda j, ids_sref: (j % s_blocks, 0)

    grid_spec = pltpu.PrefetchScalarGridSpec(
        num_scalar_prefetch=1,
        grid=(num_tiles,),
        in_specs=[
            pl.BlockSpec(memory_space=pl.ANY),                     # table stays in HBM
            pl.BlockSpec((tile_n, D), pos_index_map),              # positional block
        ],
        out_specs=pl.BlockSpec((tile_n, D), lambda j, ids_sref: (j, 0)),
        scratch_shapes=[
            pltpu.VMEM((tile_n, D), table.dtype),                  # row-gather buffer
            pltpu.SemaphoreType.DMA((tile_n,)),                    # per-row DMA semaphores
        ],
    )

    out_flat = pl.pallas_call(
        full_embedding_kernel,
        out_shape=jax.ShapeDtypeStruct((n_tokens, D), jnp.float32),
        grid_spec=grid_spec,
        compiler_params=pltpu.CompilerParams(dimension_semantics=("parallel",)),
    )(ids_flat, table, pos)
    return out_flat.reshape(B, S, D)


if __name__ == "__main__":
    key = jax.random.PRNGKey(0)
    k_ids, k_tab = jax.random.split(key)

    # Deterministic synthetic parameters (nn.Embedding default init ~ N(0, 1)).
    table = jax.random.normal(k_tab, (VOCAB, D_MODEL), dtype=jnp.float32)
    encoding = make_position_encoding(MAX_LEN, D_MODEL)

    # Example input: integer token ids (B, S).
    ids = jax.random.randint(k_ids, (BATCH, SEQ), 0, VOCAB, dtype=jnp.int32)

    out = full_embedding(ids, table, encoding)
    out = jax.block_until_ready(out)

    # Pure-JAX reference matching the PyTorch forward (eval mode).
    ref = table[ids] + encoding[:, :SEQ]
    np.testing.assert_allclose(np.asarray(out), np.asarray(ref), rtol=1e-5, atol=1e-5)

    print("KERNEL_OK")
</pallas_src>

<mosaic_0001>
module attributes {stable_mosaic.version = 11 : i64} {
  func.func @full_embedding_kernel(%arg0: i32, %arg1: memref<256xi32, #tpu.memory_space<smem>>, %arg2: memref<64x128xf32, #tpu.memory_space<any>>, %arg3: memref<128x128xf32, #tpu.memory_space<vmem>>, %arg4: memref<128x128xf32, #tpu.memory_space<vmem>>, %arg5: memref<128x128xf32, #tpu.memory_space<vmem>>, %arg6: memref<128x!tpu.dma_semaphore, #tpu.memory_space<semaphore_mem>>) attributes {dimension_semantics = [#tpu.dimension_semantics<parallel>], iteration_bounds = array<i64: 2>, scalar_prefetch = 1 : i64, scratch_operands = 2 : i64, tpu.core_type = #tpu.core_type<tc>, window_params = [{}, {pipeline_mode = #tpu.pipeline_mode<synchronous>, transform_indices = @transform_1, window_bounds = array<i64: 128, 128>}, {transform_indices = @transform_2, window_bounds = array<i64: 128, 128>}]} {
    %c128_i32 = arith.constant 128 : i32
    %0 = arith.muli %arg0, %c128_i32 : i32
    %c0_i32 = arith.constant 0 : i32
    %c128_i32_0 = arith.constant 128 : i32
    %1 = arith.addi %c0_i32, %c128_i32_0 : i32
    %c1_i32 = arith.constant 1 : i32
    scf.for %arg7 = %c0_i32 to %1 step %c1_i32  : i32 {
      %7 = arith.addi %0, %arg7 : i32
      %8 = arith.index_cast %7 : i32 to index
      %9 = memref.load %arg1[%8] : memref<256xi32, #tpu.memory_space<smem>>
      %c0_i32_11 = arith.constant 0 : i32
      %10 = tpu.memref_slice %arg2[%9, %c0_i32_11] : memref<64x128xf32, #tpu.memory_space<any>> -> memref<1x128xf32, #tpu.memory_space<any>>
      %c0_i32_12 = arith.constant 0 : i32
      %11 = tpu.memref_slice %arg5[%arg7, %c0_i32_12] : memref<128x128xf32, #tpu.memory_space<vmem>> -> memref<1x128xf32, #tpu.memory_space<vmem>>
      %12 = tpu.memref_slice %arg6[%arg7] : memref<128x!tpu.dma_semaphore, #tpu.memory_space<semaphore_mem>> -> memref<1x!tpu.dma_semaphore, #tpu.memory_space<semaphore_mem>>
      %13 = tpu.memref_squeeze %12 : memref<1x!tpu.dma_semaphore, #tpu.memory_space<semaphore_mem>> -> memref<!tpu.dma_semaphore, #tpu.memory_space<semaphore_mem>>
      tpu.enqueue_dma source(%10 : memref<1x128xf32, #tpu.memory_space<any>>) target(%11 : memref<1x128xf32, #tpu.memory_space<vmem>>) target_semaphore(%13 : memref<!tpu.dma_semaphore, #tpu.memory_space<semaphore_mem>>)
    }
    %c128_i32_1 = arith.constant 128 : i32
    %c0_i32_2 = arith.constant 0 : i32
    %c128_i32_3 = arith.constant 128 : i32
    %2 = arith.addi %c0_i32_2, %c128_i32_3 : i32
    %c1_i32_4 = arith.constant 1 : i32
    scf.for %arg7 = %c0_i32_2 to %2 step %c1_i32_4  : i32 {
      %c0_i32_11 = arith.constant 0 : i32
      %c0_i32_12 = arith.constant 0 : i32
      %7 = tpu.memref_slice %arg2[%c0_i32_11, %c0_i32_12] : memref<64x128xf32, #tpu.memory_space<any>> -> memref<1x128xf32, #tpu.memory_space<any>>
      %c0_i32_13 = arith.constant 0 : i32
      %8 = tpu.memref_slice %arg5[%arg7, %c0_i32_13] : memref<128x128xf32, #tpu.memory_space<vmem>> -> memref<1x128xf32, #tpu.memory_space<vmem>>
      %9 = tpu.memref_slice %arg6[%arg7] : memref<128x!tpu.dma_semaphore, #tpu.memory_space<semaphore_mem>> -> memref<1x!tpu.dma_semaphore, #tpu.memory_space<semaphore_mem>>
      %10 = tpu.memref_squeeze %9 : memref<1x!tpu.dma_semaphore, #tpu.memory_space<semaphore_mem>> -> memref<!tpu.dma_semaphore, #tpu.memory_space<semaphore_mem>>
      tpu.wait_dma2 semaphore(%10 : memref<!tpu.dma_semaphore, #tpu.memory_space<semaphore_mem>>) src(%7 : memref<1x128xf32, #tpu.memory_space<any>>) dst(%8 : memref<1x128xf32, #tpu.memory_space<vmem>>)
    }
    %c128_i32_5 = arith.constant 128 : i32
    %c0 = arith.constant 0 : index
    %c0_6 = arith.constant 0 : index
    %3 = vector.load %arg5[%c0, %c0_6] : memref<128x128xf32, #tpu.memory_space<vmem>>, vector<128x128xf32>
    %c0_7 = arith.constant 0 : index
    %c0_8 = arith.constant 0 : index
    %4 = vector.load %arg3[%c0_7, %c0_8] : memref<128x128xf32, #tpu.memory_space<vmem>>, vector<128x128xf32>
    %5 = arith.addf %3, %4 : vector<128x128xf32>
    %c0_9 = arith.constant 0 : index
    %c0_10 = arith.constant 0 : index
    %6 = vector.load %arg4[%c0_9, %c0_10] : memref<128x128xf32, #tpu.memory_space<vmem>>, vector<128x128xf32>
    tpu.vector_store %arg4[%c0_9, %c0_10], %5 {strides = array<i32>} : memref<128x128xf32, #tpu.memory_space<vmem>>, vector<128x128xf32>,
    return
  }
  func.func @transform_1(%arg0: i32, %arg1: memref<256xi32, #tpu.memory_space<smem>>) -> (i32, i32) {
    %c0_i32 = arith.constant 0 : i32
    %c0_i32_0 = arith.constant 0 : i32
    %c0_i32_1 = arith.constant 0 : i32
    return %c0_i32, %c0_i32_0 : i32, i32
  }
  func.func @transform_2(%arg0: i32, %arg1: memref<256xi32, #tpu.memory_space<smem>>) -> (i32, i32) {
    %c0_i32 = arith.constant 0 : i32
    %c0_i32_0 = arith.constant 0 : i32
    return %arg0, %c0_i32 : i32, i32
  }
}

</mosaic_0001>

<bundles_post_ra>
// kernel: tpu_custom_call.1
= control target key start
LH: loop header
LB: loop body
LE: loop exit
PB: predicated region body
PF: predicated region fallthrough
CT: control target
= control target key end

     0   :  { %s1556_s12 = smov [#allocation5]   ;;  %s1748_s0 = inlined_call_operand.hbm [shape: s32[256], index: 0, kind: input, shape index: {}]   ;;  %s1749_s1 = inlined_call_operand.hbm [shape: f32[64,128], index: 1, kind: input, shape index: {}]   ;;  %s1750_s2 = inlined_call_operand.hbm [shape: f32[128,128], index: 2, kind: input, shape index: {}]   ;;  %s1751_s3 = inlined_call_operand.hbm [shape: f32[256,128], index: 3, kind: output, shape index: {}]  }
   0x1   :  { %9 = dma.hbm_to_smem %s1748_s0, 32, %s1556_s12, [#allocation4] }
   0x2   :  { %1520 = dma.done.wait [#allocation4], 32 }
   0x3   :  { %1521 = vsyncadd [#allocation4], 4294967264 }
   0x4   :  { %11 = sfence }
   0x5   :  { %12 = vsyncpa [#allocation7], 0 }
   0x6   :  { %13 = vsyncpa [#allocation8], 0 }
   0x7   :  { %15 = vsyncpa [#allocation8 + $0x1], 0  ;;  %s1587_s15 = smov 0   ;;  %s1589_s16 = smov 0  }
   0x8   :  { %s1591_s17 = smov 0   ;;  %s1593_s18 = smov 0  }
   0x9 LB: > { %s1608_s0 = sadd.s32 4294967295, %s1546_s18   ;;  %s1201_s19 = sadd.s32 4294967294, %s1546_s18   ;;  %s1546_s18 = sphi %s1593_s18, %s1759_s18   ;;  %s1542_s17 = sphi %s1591_s17, %s1758_s17   ;;  %s1538_s16 = sphi %s1589_s16, %s1757_s16   ;;  %s1534_s15 = sphi %s1587_s15, %s1756_s15  }
   0xa   : > { %s1612_s20 = sadd.s32 1, %s1546_s18   ;;  %s49_s21 = sadd.s32 1, %s1542_s17 }
   0xb   : > { %s46_s22 = ssub.s32 %s1546_s18, %s1612_s20  ;;  %p59_p0 = scmp.ne.s32.totalorder %s1542_s17, %s1538_s16 }
   0xc   : > { %p47_p1 = scmp.eq.s32.totalorder %s46_s22, 0  ;;  %p60_p2 = scmp.eq.s32.totalorder %s1608_s0, 1 }
   0xd   : > { %p65_p3 = scmp.ne.s32.totalorder %s1538_s16, %s1534_s15  ;;  %p66_p4 = scmp.eq.s32.totalorder %s1201_s19, 1 }
   0xe   : > { %s1623_s23 = scalar_select %p47_p1, %s1542_s17, %s49_s21  }
   0xf   : > { %p1625_p5 = por %p60_p2, %p59_p0  ;;  %p1629_p6 = por %p66_p4, %p65_p3 }
  0x10   : > { %p1202_p7 = scmp.ge.s32.totalorder %s1546_s18, 1  ;;  %p73_p8 = scmp.lt.s32.totalorder %s1546_s18, 3 }
  0x11   : > { %s1753_s25 = scalar_select %p1629_p6, 1, 0 }
  0x12   : > { %p1357_p9 = scmp.eq.s32.totalorder %s1608_s0, 0  ;;  %p1636_p10 = pnand %p1202_p7, %p73_p8 }
  0x13   : > { %s1557_s27 = smov [#allocation6]  }
  0x14   : > { %s85_s28 = sshll.u32 %s1557_s27, 4  ;;  %p1349_p11 = pneg %p1636_p10  ;;  %s86_s28 = int_to_ptr.vmem [resolvable:$true] %s85_s28 }
  0x15   : > { %s1433_s29 = scalar_lea.vmem %s86_s28, 2048  ;;  %p1441_p3 = scmp.lt.s32.totalorder %s86_s28, %s86_s28 }
  0x16   : > { %p1350_p12 = pnand %p1357_p9, %p1349_p11  ;;  %p1434_p0 = scmp.ne.s32.totalorder %s86_s28, %s1433_s29 }
  0x17   : > { %p1442_p4 = scmp.lt.s32.totalorder %s1433_s29, %s1433_s29 }
  0x18   : > { %p1424_p13 = pneg %p1350_p12 }
  0x19   : > { %p1443_p6 = por %p1442_p4, %p1441_p3 }
  0x1a   : > { %p1436_p1 = pnand %p1434_p0, %p1424_p13 }
  0x1c   : > { %p1437_p2 = pneg %p1436_p1 }
  0x1e   : > { %p1444_p7 = pnand %p1443_p6, %p1437_p2 }
  0x20   : > { %1447 = shalt.err (!%p1444_p7)
}
  0x21   : > { %s1558_s30 = smov 128   ;;  %s1559_s4 = smov 8  }
  0x22   : > { %1352 = dma.hbm_to_vmem [thread:$0]  (!%p1350_p12), %s1750_s2, 2048, %s86_s28, [#allocation7], %s1558_s30, %s1558_s30, %s1559_s4  }
  0x23   : > { %101 = sbr.rel (%p1636_p10) target bundleno = 113 (0x71), region = 24 }
  0x28   : > { %1523 = dma.done.wait (%p1357_p9), [#allocation7], 2048  }
  0x29   : > { %1525 = vsyncadd (%p1357_p9), [#allocation7], 4294965248  ;;  %s113_s7 = sand.u32 1, %s1538_s16   ;;  %s1207_s8 = sshll.u32 %s1608_s0, 7 }
  0x2a   : > { %s1206_s9 = sshll.u32 %s113_s7, 7  ;;  %s1659_s11 = smov 0  }
  0x2b   : > { %s1657_s10 = scalar_lea.vmem [#allocation9], %s1206_s9 }
  0x2c LB: >> { %s124_s12 = sadd.s32 %s1550_s11, %s1207_s8  ;;  %s128_s14 = scalar_lea.vmem [#allocation2], %s1550_s11  ;;  %s1550_s11 = sphi %s1659_s11, %s123_s11  }
  0x2d   : >> { %s125_s13 = sld [smem:[#allocation5 + %s124_s12]]  ;;  %s137_s19 = sshll.u32 %s128_s14, 4  ;;  %s138_s19 = int_to_ptr.vmem [resolvable:$true] %s137_s19 }
  0x2e   : >> { %s129_s28 = scalar_lea.sflag [#allocation3], %s1550_s11  ;;  %s1450_s5 = scalar_lea.hbm %s1749_s1, 1024 }
  0x33   : >> { %s1208_s21 = sshll.u32 %s125_s13, 4 }
  0x34   : >> { %s127_s27 = scalar_lea.hbm %s1749_s1, %s1208_s21 }
  0x35   : >> { %s1448_s29 = scalar_lea.hbm %s127_s27, 16  ;;  %p1451_p8 = scmp.lt.s32.totalorder %s127_s27, %s1749_s1 }
  0x36   : >> { %p1449_p6 = scmp.ne.s32.totalorder %s127_s27, %s1448_s29  ;;  %p1452_p9 = scmp.lt.s32.totalorder %s1450_s5, %s1448_s29 }
  0x38   : >> { %p1453_p10 = por %p1452_p9, %p1451_p8 }
  0x3a   : >> { %p1454_p11 = pnand %p1453_p10, %p1449_p6 }
  0x3c   : >> { %1457 = shalt.err (!%p1454_p11)  }
  0x3d   : >> { %s1458_s12 = scalar_lea.vmem %s138_s19, 16  ;;  %s1560_s13 = smov [#allocation2]  }
  0x3e   : >> { %p1459_p12 = scmp.ne.s32.totalorder %s138_s19, %s1458_s12  ;;  %s1460_s14 = sshll.u32 %s1560_s13, 4  ;;  %s1461_s14 = int_to_ptr.vmem [resolvable:$false] %s1460_s14 }
  0x3f   : >> { %s1462_s21 = scalar_lea.vmem %s1461_s14, 2048  ;;  %p1463_p13 = scmp.lt.s32.totalorder %s138_s19, %s1461_s14 }
  0x40   : >> { %p1464_p0 = scmp.lt.s32.totalorder %s1462_s21, %s1458_s12 }
  0x42   : >> { %p1465_p1 = por %p1464_p0, %p1463_p13 }
  0x44   : >> { %p1466_p2 = pnand %p1465_p1, %p1459_p12 }
  0x46   : >> { %1469 = shalt.err (!%p1466_p2)  }
  0x47   : >> { %140 = dma.hbm_to_vmem [thread:$0]  %s127_s27, 16, %s138_s19, %s129_s28 }
  0x48   : >> { %s123_s11 = sadd.s32 1, %s1550_s11  }
  0x49   : >> { %p120_p3 = scmp.ge.s32.totalorder %s123_s11, 128  }
  0x4a   : > { %s1552_s22 = smov (%p120_p3), 0  }
  0x4b   : > { %122 = sbr.rel (!%p120_p3) target bundleno = 44 (0x2c), region = 210 }
  0x50 LB: >> { %s147_s26 = scalar_lea.sflag [#allocation3], %s1554_s22  ;;  %s1554_s22 = sphi %s1552_s22, %s146_s22  }
  0x51   : >> { %1526 = dma.done.wait %s147_s26, 16 }
  0x52   : >> { %1527 = vsyncadd %s147_s26, 4294967280  ;;  %s146_s22 = sadd.s32 1, %s1554_s22  }
  0x53   : >> { %p143_p4 = scmp.ge.s32.totalorder %s146_s22, 128  }
  0x54   : > { %v151_v0 = vld [vmem:[#allocation2] sm:$0xff] (%p143_p4)  ;;  %v152_v2 = vld [vmem:[#allocation2 + $0x8] sm:$0xff] (%p143_p4)  ;;  %v153_v5 = vld [vmem:[#allocation2 + $0x10] sm:$0xff] (%p143_p4)  ;;  %s1342_s8 = sshll.u32 (%p143_p4), %s1608_s0, 11  ;;  %s229_s11 = sshll.u32 (%p143_p4), %s1657_s10, 4  ;;  %s1700_s11 = int_to_ptr.vmem [resolvable:$true] %s229_s11 }
  0x55   : > { %145 = sbr.rel (!%p143_p4) target bundleno = 80 (0x50), region = 221  ;;  %v167_v1 = vld [vmem:[#allocation6] sm:$0xff] (%p143_p4)  ;;  %v168_v4 = vld [vmem:[#allocation6 + $0x8] sm:$0xff] (%p143_p4)  ;;  %v169_v6 = vld [vmem:[#allocation6 + $0x10] sm:$0xff] (%p143_p4)  ;;  %s1698_s27 = scalar_lea.hbm (%p143_p4), %s1751_s3, %s1342_s8 }
  0x56   : > { %v183_v3 = vadd.f32 (%p143_p4), %v167_v1, %v151_v0  ;;  %v184_v7 = vadd.f32 (%p143_p4), %v168_v4, %v152_v2  ;;  %v185_v8 = vadd.f32 (%p143_p4), %v169_v6, %v153_v5  ;;  %v154_v9 = vld [vmem:[#allocation2 + $0x18] sm:$0xff] (%p143_p4)  ;;  %v155_v11 = vld [vmem:[#allocation2 + $0x20] sm:$0xff] (%p143_p4)  ;;  %v156_v14 = vld [vmem:[#allocation2 + $0x28] sm:$0xff] (%p143_p4)  ;;  %s1708_s28 = scalar_lea.sflag (%p143_p4), [#allocation8], %s113_s7  ;;  %s1470_s29 = scalar_lea.vmem (%p143_p4), %s1700_s11, 2048 }
  0x57   : > { %v170_v10 = vld [vmem:[#allocation6 + $0x18] sm:$0xff] (%p143_p4)  ;;  %v171_v13 = vld [vmem:[#allocation6 + $0x20] sm:$0xff] (%p143_p4)  ;;  %v172_v15 = vld [vmem:[#allocation6 + $0x28] sm:$0xff] (%p143_p4)  ;;  %p1471_p7 = scmp.ne.s32.totalorder (%p143_p4), %s1700_s11, %s1470_s29  ;;  %s1561_s30 = smov (%p143_p4), [#allocation9]  }
  0x58   : > { %199 = vst [vmem:[%s1657_s10] sm:$0xff] (%p143_p4), %v183_v3  ;;  %v186_v12 = vadd.f32 (%p143_p4), %v170_v10, %v154_v9  ;;  %200 = vst [vmem:[%s1657_s10 + $0x8] sm:$0xff] (%p143_p4), %v184_v7  ;;  %v187_v16 = vadd.f32 (%p143_p4), %v171_v13, %v155_v11  ;;  %v188_v17 = vadd.f32 (%p143_p4), %v172_v15, %v156_v14  ;;  %v157_v18 = vld [vmem:[#allocation2 + $0x30] sm:$0xff] (%p143_p4)  ;;  %v158_v20 = vld [vmem:[#allocation2 + $0x38] sm:$0xff] (%p143_p4)  ;;  %s1474_s4 = sshll.u32 (%p143_p4), %s1561_s30, 4  ;;  %s1475_s4 = int_to_ptr.vmem [resolvable:$false] %s1474_s4 }
  0x59   : > { %201 = vst [vmem:[%s1657_s10 + $0x10] sm:$0xff] (%p143_p4), %v185_v8  ;;  %v173_v19 = vld [vmem:[#allocation6 + $0x30] sm:$0xff] (%p143_p4)  ;;  %v174_v22 = vld [vmem:[#allocation6 + $0x38] sm:$0xff] (%p143_p4)  ;;  %v159_v23 = vld [vmem:[#allocation2 + $0x40] sm:$0xff] (%p143_p4)  ;;  %p1472_p6 = pnand (%p143_p4), %p1471_p7, %p1625_p5  ;;  %s1476_s5 = scalar_lea.vmem (%p143_p4), %s1475_s4, 4096 }
  0x5a   : > { %202 = vst [vmem:[%s1657_s10 + $0x18] sm:$0xff] %v186_v12  ;;  %v189_v21 = vadd.f32 %v173_v19, %v157_v18  ;;  %v175_v24 = vld [vmem:[#allocation6 + $0x40] sm:$0xff]  ;;  %203 = vst [vmem:[%s1657_s10 + $0x20] sm:$0xff] %v187_v16  ;;  %v190_v25 = vadd.f32 %v174_v22, %v158_v20  ;;  %v160_v27 = vld [vmem:[#allocation2 + $0x48] sm:$0xff]  ;;  %p1477_p9 = scmp.lt.s32.totalorder %s1700_s11, %s1475_s4  ;;  %p1478_p10 = scmp.lt.s32.totalorder %s1476_s5, %s1470_s29 }
  0x5b   : > { %204 = vst [vmem:[%s1657_s10 + $0x28] sm:$0xff] %v188_v17  ;;  %v191_v26 = vadd.f32 %v175_v24, %v159_v23  ;;  %v176_v28 = vld [vmem:[#allocation6 + $0x48] sm:$0xff]  ;;  %v161_v29 = vld [vmem:[#allocation2 + $0x50] sm:$0xff]  ;;  %v162_v32 = vld [vmem:[#allocation2 + $0x58] sm:$0xff]  ;;  %p1473_p8 = pneg %p1472_p6 }
  0x5c   : > { %205 = vst [vmem:[%s1657_s10 + $0x30] sm:$0xff] %v189_v21  ;;  %v192_v30 = vadd.f32 %v176_v28, %v160_v27  ;;  %v177_v31 = vld [vmem:[#allocation6 + $0x50] sm:$0xff]  ;;  %v178_v33 = vld [vmem:[#allocation6 + $0x58] sm:$0xff]  ;;  %206 = vst [vmem:[%s1657_s10 + $0x38] sm:$0xff] %v190_v25  ;;  %p1479_p11 = por %p1478_p10, %p1477_p9 }
  0x5d   : > { %207 = vst [vmem:[%s1657_s10 + $0x40] sm:$0xff] %v191_v26  ;;  %v193_v34 = vadd.f32 %v177_v31, %v161_v29  ;;  %v194_v35 = vadd.f32 %v178_v33, %v162_v32  ;;  %v163_v36 = vld [vmem:[#allocation2 + $0x60] sm:$0xff]  ;;  %v164_v38 = vld [vmem:[#allocation2 + $0x68] sm:$0xff]  ;;  %v165_v41 = vld [vmem:[#allocation2 + $0x70] sm:$0xff] }
  0x5e   : > { %v179_v37 = vld [vmem:[#allocation6 + $0x60] sm:$0xff]  ;;  %208 = vst [vmem:[%s1657_s10 + $0x48] sm:$0xff] %v192_v30  ;;  %v180_v40 = vld [vmem:[#allocation6 + $0x68] sm:$0xff]  ;;  %v181_v42 = vld [vmem:[#allocation6 + $0x70] sm:$0xff]  ;;  %p1480_p12 = pnand %p1479_p11, %p1473_p8 }
  0x5f   : > { %v195_v39 = vadd.f32 %v179_v37, %v163_v36  ;;  %209 = vst [vmem:[%s1657_s10 + $0x50] sm:$0xff] %v193_v34  ;;  %210 = vst [vmem:[%s1657_s10 + $0x58] sm:$0xff] %v194_v35  ;;  %v196_v43 = vadd.f32 %v180_v40, %v164_v38  ;;  %v197_v44 = vadd.f32 %v181_v42, %v165_v41  ;;  %v166_v45 = vld [vmem:[#allocation2 + $0x78] sm:$0xff] }
  0x60   : > { %v182_v46 = vld [vmem:[#allocation6 + $0x78] sm:$0xff] }
  0x61   : > { %211 = vst [vmem:[%s1657_s10 + $0x60] sm:$0xff] %v195_v39  ;;  %v198_v47 = vadd.f32 %v182_v46, %v166_v45  ;;  %212 = vst [vmem:[%s1657_s10 + $0x68] sm:$0xff] %v196_v43 }
  0x62   : > { %213 = vst [vmem:[%s1657_s10 + $0x70] sm:$0xff] %v197_v44 }
  0x63   : > { %214 = vst [vmem:[%s1657_s10 + $0x78] sm:$0xff] %v198_v47 }
  0x64   : > { %1483 = shalt.err (!%p1480_p12)
}
  0x65   : > { %s1484_s7 = scalar_lea.hbm %s1698_s27, 2048  ;;  %s1488_s9 = scalar_lea.hbm %s1751_s3, 4096 }
  0x66   : > { %p1485_p13 = scmp.ne.s32.totalorder %s1698_s27, %s1484_s7  ;;  %p1489_p2 = scmp.lt.s32.totalorder %s1698_s27, %s1751_s3 }
  0x67   : > { %p1490_p3 = scmp.lt.s32.totalorder %s1488_s9, %s1484_s7 }
  0x68   : > { %p1486_p0 = pnand %p1485_p13, %p1625_p5 }
  0x69   : > { %p1491_p4 = por %p1490_p3, %p1489_p2 }
  0x6a   : > { %p1487_p1 = pneg %p1486_p0 }
  0x6c   : > { %p1492_p7 = pnand %p1491_p4, %p1487_p1 }
  0x6e   : > { %1495 = shalt.err (!%p1492_p7)
}
  0x6f   : > { %s1562_s14 = smov 128   ;;  %s1563_s21 = smov 8  }
  0x70   : > { %1347 = dma.vmem_to_hbm [thread:$0]  (%p1625_p5), %s1700_s11, 2048, %s1698_s27, %s1708_s28, %s1562_s14, %s1562_s14, %s1563_s21  }
  0x71 PF: > { %p1359_p6 = scmp.ge.s32.totalorder %s1546_s18, 2  ;;  %s244_s22 = sand.u32 1, %s1534_s15  }
  0x72   : > { %p1755_p8 = scmp.ne.s32.totalorder %s1753_s25, 0  ;;  %s245_s26 = scalar_lea.sflag [#allocation8], %s244_s22 }
  0x74   : > { %p1354_p9 = pnand %p1359_p6, %p1755_p8 }
  0x76   : > { %p1355_p10 = pneg %p1354_p9 }
  0x78   : > { %1529 = dma.done.wait (%p1355_p10), %s245_s26, 2048  }
  0x79   : > { %1531 = vsyncadd (%p1355_p10), %s245_s26, 4294965248  ;;  %p18_p11 = scmp.ge.s32.totalorder %s1612_s20, 4   ;;  %s1756_s15 = smov %s1538_s16 }
  0x7a   : > { %s1757_s16 = smov %s1542_s17  ;;  %s1758_s17 = smov %s1623_s23 }
  0x7b   : > { %s1759_s18 = smov %s1612_s20  ;;  %20 = sbr.rel (!%p18_p11) target bundleno = 9 (0x9), region = 232 }
  0x80   :  { %250 = vsyncpa [#allocation7], 1 }
  0x81   :  { %252 = vsyncpa [#allocation7 + $0x1], 1 }
  0x82   :  { %253 = vsyncpa [#allocation8], 1 }
  0x83   :  { %255 = vsyncpa [#allocation8 + $0x1], 1 }
  0x84   :  { %256 = vsyncmov [#allocation3] }
  0x87   :  { %s257_s18 = vpop.sfrf %256 }
  0x88   :  { %p1214_p5 = scmp.ne.s32.totalorder %s257_s18, 0 }
  0x8a   :  { %261 = shalt.err (%p1214_p5)  }
  0x8b   :  { %263 = vsyncmov [#allocation3 + $0x1] }
  0x8e   :  { %s264_s24 = vpop.sfrf %263 }
  0x8f   :  { %p1215_p12 = scmp.ne.s32.totalorder %s264_s24, 0 }
  0x91   :  { %268 = shalt.err (%p1215_p12)  }
  0x92   :  { %270 = vsyncmov [#allocation3 + $0x2] }
  0x95   :  { %s271_s25 = vpop.sfrf %270 }
  0x96   :  { %p1216_p13 = scmp.ne.s32.totalorder %s271_s25, 0 }
  0x98   :  { %275 = shalt.err (%p1216_p13)  }
  0x99   :  { %277 = vsyncmov [#allocation3 + $0x3] }
  0x9c   :  { %s278_s23 = vpop.sfrf %277 }
  0x9d   :  { %p1217_p0 = scmp.ne.s32.totalorder %s278_s23, 0 }
  0x9f   :  { %282 = shalt.err (%p1217_p0)  }
  0xa0   :  { %284 = vsyncmov [#allocation3 + $0x4] }
  0xa3   :  { %s285_s1 = vpop.sfrf %284 }
  0xa4   :  { %p1218_p1 = scmp.ne.s32.totalorder %s285_s1, 0 }
  0xa6   :  { %289 = shalt.err (%p1218_p1)  }
  0xa7   :  { %291 = vsyncmov [#allocation3 + $0x5] }
  0xaa   :  { %s292_s2 = vpop.sfrf %291 }
  0xab   :  { %p1219_p2 = scmp.ne.s32.totalorder %s292_s2, 0 }
  0xad   :  { %296 = shalt.err (%p1219_p2)  }
  0xae   :  { %298 = vsyncmov [#allocation3 + $0x6] }
  0xb1   :  { %s299_s3 = vpop.sfrf %298 }
  0xb2   :  { %p1220_p3 = scmp.ne.s32.totalorder %s299_s3, 0 }
  0xb4   :  { %303 = shalt.err (%p1220_p3)  }
  0xb5   :  { %305 = vsyncmov [#allocation3 + $0x7] }
  0xb8   :  { %s306_s15 = vpop.sfrf %305 }
  0xb9   :  { %p1221_p4 = scmp.ne.s32.totalorder %s306_s15, 0 }
  0xbb   :  { %310 = shalt.err (%p1221_p4)  }
  0xbc   :  { %312 = vsyncmov [#allocation3 + $0x8] }
  0xbf   :  { %s313_s16 = vpop.sfrf %312 }
  0xc0   :  { %p1222_p7 = scmp.ne.s32.totalorder %s313_s16, 0 }
  0xc2   :  { %317 = shalt.err (%p1222_p7)  }
  0xc3   :  { %319 = vsyncmov [#allocation3 + $0x9] }
  0xc6   :  { %s320_s17 = vpop.sfrf %319 }
  0xc7   :  { %p1223_p6 = scmp.ne.s32.totalorder %s320_s17, 0 }
  0xc9   :  { %324 = shalt.err (%p1223_p6)  }
  0xca   :  { %326 = vsyncmov [#allocation3 + $0xa] }
  0xcd   :  { %s327_s20 = vpop.sfrf %326 }
  0xce   :  { %p1224_p8 = scmp.ne.s32.totalorder %s327_s20, 0 }
  0xd0   :  { %331 = shalt.err (%p1224_p8)  }
  0xd1   :  { %333 = vsyncmov [#allocation3 + $0xb] }
  0xd4   :  { %s334_s8 = vpop.sfrf %333 }
  0xd5   :  { %p1225_p9 = scmp.ne.s32.totalorder %s334_s8, 0 }
  0xd7   :  { %338 = shalt.err (%p1225_p9)  }
  0xd8   :  { %340 = vsyncmov [#allocation3 + $0xc] }
  0xdb   :  { %s341_s11 = vpop.sfrf %340 }
  0xdc   :  { %p1226_p10 = scmp.ne.s32.totalorder %s341_s11, 0 }
  0xde   :  { %345 = shalt.err (%p1226_p10)  }
  0xdf   :  { %347 = vsyncmov [#allocation3 + $0xd] }
  0xe2   :  { %s348_s0 = vpop.sfrf %347 }
  0xe3   :  { %p1227_p11 = scmp.ne.s32.totalorder %s348_s0, 0 }
  0xe5   :  { %352 = shalt.err (%p1227_p11)  }
  0xe6   :  { %354 = vsyncmov [#allocation3 + $0xe] }
  0xe9   :  { %s355_s19 = vpop.sfrf %354 }
  0xea   :  { %p1228_p5 = scmp.ne.s32.totalorder %s355_s19, 0 }
  0xec   :  { %359 = shalt.err (%p1228_p5)  }
  0xed   :  { %361 = vsyncmov [#allocation3 + $0xf] }
  0xf0   :  { %s362_s27 = vpop.sfrf %361 }
  0xf1   :  { %p1229_p12 = scmp.ne.s32.totalorder %s362_s27, 0 }
  0xf3   :  { %366 = shalt.err (%p1229_p12)  }
  0xf4   :  { %368 = vsyncmov [#allocation3 + $0x10] }
  0xf7   :  { %s369_s28 = vpop.sfrf %368 }
  0xf8   :  { %p1230_p13 = scmp.ne.s32.totalorder %s369_s28, 0 }
  0xfa   :  { %373 = shalt.err (%p1230_p13)  }
  0xfb   :  { %375 = vsyncmov [#allocation3 + $0x11] }
  0xfe   :  { %s376_s29 = vpop.sfrf %375 }
  0xff   :  { %p1231_p0 = scmp.ne.s32.totalorder %s376_s29, 0 }
 0x101   :  { %380 = shalt.err (%p1231_p0)  }
 0x102   :  { %382 = vsyncmov [#allocation3 + $0x12] }
 0x105   :  { %s383_s30 = vpop.sfrf %382 }
 0x106   :  { %p1232_p1 = scmp.ne.s32.totalorder %s383_s30, 0 }
 0x108   :  { %387 = shalt.err (%p1232_p1)  }
 0x109   :  { %389 = vsyncmov [#allocation3 + $0x13] }
 0x10c   :  { %s390_s4 = vpop.sfrf %389 }
 0x10d   :  { %p1233_p2 = scmp.ne.s32.totalorder %s390_s4, 0 }
 0x10f   :  { %394 = shalt.err (%p1233_p2)  }
 0x110   :  { %396 = vsyncmov [#allocation3 + $0x14] }
 0x113   :  { %s397_s5 = vpop.sfrf %396 }
 0x114   :  { %p1234_p3 = scmp.ne.s32.totalorder %s397_s5, 0 }
 0x116   :  { %401 = shalt.err (%p1234_p3)  }
 0x117   :  { %403 = vsyncmov [#allocation3 + $0x15] }
 0x11a   :  { %s404_s7 = vpop.sfrf %403 }
 0x11b   :  { %p1235_p4 = scmp.ne.s32.totalorder %s404_s7, 0 }
 0x11d   :  { %408 = shalt.err (%p1235_p4)  }
 0x11e   :  { %410 = vsyncmov [#allocation3 + $0x16] }
 0x121   :  { %s411_s10 = vpop.sfrf %410 }
 0x122   :  { %p1236_p7 = scmp.ne.s32.totalorder %s411_s10, 0 }
 0x124   :  { %415 = shalt.err (%p1236_p7)  }
 0x125   :  { %417 = vsyncmov [#allocation3 + $0x17] }
 0x128   :  { %s418_s6 = vpop.sfrf %417 }
 0x129   :  { %p1237_p6 = scmp.ne.s32.totalorder %s418_s6, 0 }
 0x12b   :  { %422 = shalt.err (%p1237_p6)  }
 0x12c   :  { %424 = vsyncmov [#allocation3 + $0x18] }
 0x12f   :  { %s425_s9 = vpop.sfrf %424 }
 0x130   :  { %p1238_p8 = scmp.ne.s32.totalorder %s425_s9, 0 }
 0x132   :  { %429 = shalt.err (%p1238_p8)  }
 0x133   :  { %431 = vsyncmov [#allocation3 + $0x19] }
 0x136   :  { %s432_s12 = vpop.sfrf %431 }
 0x137   :  { %p1239_p9 = scmp.ne.s32.totalorder %s432_s12, 0 }
 0x139   :  { %436 = shalt.err (%p1239_p9)  }
 0x13a   :  { %438 = vsyncmov [#allocation3 + $0x1a] }
 0x13d   :  { %s439_s13 = vpop.sfrf %438 }
 0x13e   :  { %p1240_p10 = scmp.ne.s32.totalorder %s439_s13, 0 }
 0x140   :  { %443 = shalt.err (%p1240_p10)  }
 0x141   :  { %445 = vsyncmov [#allocation3 + $0x1b] }
 0x144   :  { %s446_s14 = vpop.sfrf %445 }
 0x145   :  { %p1241_p11 = scmp.ne.s32.totalorder %s446_s14, 0 }
 0x147   :  { %450 = shalt.err (%p1241_p11)  }
 0x148   :  { %452 = vsyncmov [#allocation3 + $0x1c] }
 0x14b   :  { %s453_s21 = vpop.sfrf %452 }
 0x14c   :  { %p1242_p5 = scmp.ne.s32.totalorder %s453_s21, 0 }
 0x14e   :  { %457 = shalt.err (%p1242_p5)  }
 0x14f   :  { %459 = vsyncmov [#allocation3 + $0x1d] }
 0x152   :  { %s460_s22 = vpop.sfrf %459 }
 0x153   :  { %p1243_p12 = scmp.ne.s32.totalorder %s460_s22, 0 }
 0x155   :  { %464 = shalt.err (%p1243_p12)  }
 0x156   :  { %466 = vsyncmov [#allocation3 + $0x1e] }
 0x159   :  { %s467_s26 = vpop.sfrf %466 }
 0x15a   :  { %p1244_p13 = scmp.ne.s32.totalorder %s467_s26, 0 }
 0x15c   :  { %471 = shalt.err (%p1244_p13)  }
 0x15d   :  { %473 = vsyncmov [#allocation3 + $0x1f] }
 0x160   :  { %s474_s18 = vpop.sfrf %473 }
 0x161   :  { %p1245_p0 = scmp.ne.s32.totalorder %s474_s18, 0 }
 0x163   :  { %478 = shalt.err (%p1245_p0)  }
 0x164   :  { %480 = vsyncmov [#allocation3 + $0x20] }
 0x167   :  { %s481_s24 = vpop.sfrf %480 }
 0x168   :  { %p1246_p1 = scmp.ne.s32.totalorder %s481_s24, 0 }
 0x16a   :  { %485 = shalt.err (%p1246_p1)  }
 0x16b   :  { %487 = vsyncmov [#allocation3 + $0x21] }
 0x16e   :  { %s488_s25 = vpop.sfrf %487 }
 0x16f   :  { %p1247_p2 = scmp.ne.s32.totalorder %s488_s25, 0 }
 0x171   :  { %492 = shalt.err (%p1247_p2)  }
 0x172   :  { %494 = vsyncmov [#allocation3 + $0x22] }
 0x175   :  { %s495_s23 = vpop.sfrf %494 }
 0x176   :  { %p1248_p3 = scmp.ne.s32.totalorder %s495_s23, 0 }
 0x178   :  { %499 = shalt.err (%p1248_p3)  }
 0x179   :  { %501 = vsyncmov [#allocation3 + $0x23] }
 0x17c   :  { %s502_s1 = vpop.sfrf %501 }
 0x17d   :  { %p1249_p4 = scmp.ne.s32.totalorder %s502_s1, 0 }
 0x17f   :  { %506 = shalt.err (%p1249_p4)  }
 0x180   :  { %508 = vsyncmov [#allocation3 + $0x24] }
 0x183   :  { %s509_s2 = vpop.sfrf %508 }
 0x184   :  { %p1250_p7 = scmp.ne.s32.totalorder %s509_s2, 0 }
 0x186   :  { %513 = shalt.err (%p1250_p7)  }
 0x187   :  { %515 = vsyncmov [#allocation3 + $0x25] }
 0x18a   :  { %s516_s3 = vpop.sfrf %515 }
 0x18b   :  { %p1251_p6 = scmp.ne.s32.totalorder %s516_s3, 0 }
 0x18d   :  { %520 = shalt.err (%p1251_p6)  }
 0x18e   :  { %522 = vsyncmov [#allocation3 + $0x26] }
 0x191   :  { %s523_s15 = vpop.sfrf %522 }
 0x192   :  { %p1252_p8 = scmp.ne.s32.totalorder %s523_s15, 0 }
 0x194   :  { %527 = shalt.err (%p1252_p8)  }
 0x195   :  { %529 = vsyncmov [#allocation3 + $0x27] }
 0x198   :  { %s530_s16 = vpop.sfrf %529 }
 0x199   :  { %p1253_p9 = scmp.ne.s32.totalorder %s530_s16, 0 }
 0x19b   :  { %534 = shalt.err (%p1253_p9)  }
 0x19c   :  { %536 = vsyncmov [#allocation3 + $0x28] }
 0x19f   :  { %s537_s17 = vpop.sfrf %536 }
 0x1a0   :  { %p1254_p10 = scmp.ne.s32.totalorder %s537_s17, 0 }
 0x1a2   :  { %541 = shalt.err (%p1254_p10)  }
 0x1a3   :  { %543 = vsyncmov [#allocation3 + $0x29] }
 0x1a6   :  { %s544_s20 = vpop.sfrf %543 }
 0x1a7   :  { %p1255_p11 = scmp.ne.s32.totalorder %s544_s20, 0 }
 0x1a9   :  { %548 = shalt.err (%p1255_p11)  }
 0x1aa   :  { %550 = vsyncmov [#allocation3 + $0x2a] }
 0x1ad   :  { %s551_s8 = vpop.sfrf %550 }
 0x1ae   :  { %p1256_p5 = scmp.ne.s32.totalorder %s551_s8, 0 }
 0x1b0   :  { %555 = shalt.err (%p1256_p5)  }
 0x1b1   :  { %557 = vsyncmov [#allocation3 + $0x2b] }
 0x1b4   :  { %s558_s11 = vpop.sfrf %557 }
 0x1b5   :  { %p1257_p12 = scmp.ne.s32.totalorder %s558_s11, 0 }
 0x1b7   :  { %562 = shalt.err (%p1257_p12)  }
 0x1b8   :  { %564 = vsyncmov [#allocation3 + $0x2c] }
 0x1bb   :  { %s565_s0 = vpop.sfrf %564 }
 0x1bc   :  { %p1258_p13 = scmp.ne.s32.totalorder %s565_s0, 0 }
 0x1be   :  { %569 = shalt.err (%p1258_p13)  }
 0x1bf   :  { %571 = vsyncmov [#allocation3 + $0x2d] }
 0x1c2   :  { %s572_s19 = vpop.sfrf %571 }
 0x1c3   :  { %p1259_p0 = scmp.ne.s32.totalorder %s572_s19, 0 }
 0x1c5   :  { %576 = shalt.err (%p1259_p0)  }
 0x1c6   :  { %578 = vsyncmov [#allocation3 + $0x2e] }
 0x1c9   :  { %s579_s27 = vpop.sfrf %578 }
 0x1ca   :  { %p1260_p1 = scmp.ne.s32.totalorder %s579_s27, 0 }
 0x1cc   :  { %583 = shalt.err (%p1260_p1)  }
 0x1cd   :  { %585 = vsyncmov [#allocation3 + $0x2f] }
 0x1d0   :  { %s586_s28 = vpop.sfrf %585 }
 0x1d1   :  { %p1261_p2 = scmp.ne.s32.totalorder %s586_s28, 0 }
 0x1d3   :  { %590 = shalt.err (%p1261_p2)  }
 0x1d4   :  { %592 = vsyncmov [#allocation3 + $0x30] }
 0x1d7   :  { %s593_s29 = vpop.sfrf %592 }
 0x1d8   :  { %p1262_p3 = scmp.ne.s32.totalorder %s593_s29, 0 }
 0x1da   :  { %597 = shalt.err (%p1262_p3)  }
 0x1db   :  { %599 = vsyncmov [#allocation3 + $0x31] }
 0x1de   :  { %s600_s30 = vpop.sfrf %599 }
 0x1df   :  { %p1263_p4 = scmp.ne.s32.totalorder %s600_s30, 0 }
 0x1e1   :  { %604 = shalt.err (%p1263_p4)  }
 0x1e2   :  { %606 = vsyncmov [#allocation3 + $0x32] }
 0x1e5   :  { %s607_s4 = vpop.sfrf %606 }
 0x1e6   :  { %p1264_p7 = scmp.ne.s32.totalorder %s607_s4, 0 }
 0x1e8   :  { %611 = shalt.err (%p1264_p7)  }
 0x1e9   :  { %613 = vsyncmov [#allocation3 + $0x33] }
 0x1ec   :  { %s614_s5 = vpop.sfrf %613 }
 0x1ed   :  { %p1265_p6 = scmp.ne.s32.totalorder %s614_s5, 0 }
 0x1ef   :  { %618 = shalt.err (%p1265_p6)  }
 0x1f0   :  { %620 = vsyncmov [#allocation3 + $0x34] }
 0x1f3   :  { %s621_s7 = vpop.sfrf %620 }
 0x1f4   :  { %p1266_p8 = scmp.ne.s32.totalorder %s621_s7, 0 }
 0x1f6   :  { %625 = shalt.err (%p1266_p8)  }
 0x1f7   :  { %627 = vsyncmov [#allocation3 + $0x35] }
 0x1fa   :  { %s628_s10 = vpop.sfrf %627 }
 0x1fb   :  { %p1267_p9 = scmp.ne.s32.totalorder %s628_s10, 0 }
 0x1fd   :  { %632 = shalt.err (%p1267_p9)  }
 0x1fe   :  { %634 = vsyncmov [#allocation3 + $0x36] }
 0x201   :  { %s635_s6 = vpop.sfrf %634 }
 0x202   :  { %p1268_p10 = scmp.ne.s32.totalorder %s635_s6, 0 }
 0x204   :  { %639 = shalt.err (%p1268_p10)  }
 0x205   :  { %641 = vsyncmov [#allocation3 + $0x37] }
 0x208   :  { %s642_s9 = vpop.sfrf %641 }
 0x209   :  { %p1269_p11 = scmp.ne.s32.totalorder %s642_s9, 0 }
 0x20b   :  { %646 = shalt.err (%p1269_p11)  }
 0x20c   :  { %648 = vsyncmov [#allocation3 + $0x38] }
 0x20f   :  { %s649_s12 = vpop.sfrf %648 }
 0x210   :  { %p1270_p5 = scmp.ne.s32.totalorder %s649_s12, 0 }
 0x212   :  { %653 = shalt.err (%p1270_p5)  }
 0x213   :  { %655 = vsyncmov [#allocation3 + $0x39] }
 0x216   :  { %s656_s13 = vpop.sfrf %655 }
 0x217   :  { %p1271_p12 = scmp.ne.s32.totalorder %s656_s13, 0 }
 0x219   :  { %660 = shalt.err (%p1271_p12)  }
 0x21a   :  { %662 = vsyncmov [#allocation3 + $0x3a] }
 0x21d   :  { %s663_s14 = vpop.sfrf %662 }
 0x21e   :  { %p1272_p13 = scmp.ne.s32.totalorder %s663_s14, 0 }
 0x220   :  { %667 = shalt.err (%p1272_p13)  }
 0x221   :  { %669 = vsyncmov [#allocation3 + $0x3b] }
 0x224   :  { %s670_s21 = vpop.sfrf %669 }
 0x225   :  { %p1273_p0 = scmp.ne.s32.totalorder %s670_s21, 0 }
 0x227   :  { %674 = shalt.err (%p1273_p0)  }
 0x228   :  { %676 = vsyncmov [#allocation3 + $0x3c] }
 0x22b   :  { %s677_s22 = vpop.sfrf %676 }
 0x22c   :  { %p1274_p1 = scmp.ne.s32.totalorder %s677_s22, 0 }
 0x22e   :  { %681 = shalt.err (%p1274_p1)  }
 0x22f   :  { %683 = vsyncmov [#allocation3 + $0x3d] }
 0x232   :  { %s684_s26 = vpop.sfrf %683 }
 0x233   :  { %p1275_p2 = scmp.ne.s32.totalorder %s684_s26, 0 }
 0x235   :  { %688 = shalt.err (%p1275_p2)  }
 0x236   :  { %690 = vsyncmov [#allocation3 + $0x3e] }
 0x239   :  { %s691_s18 = vpop.sfrf %690 }
 0x23a   :  { %p1276_p3 = scmp.ne.s32.totalorder %s691_s18, 0 }
 0x23c   :  { %695 = shalt.err (%p1276_p3)  }
 0x23d   :  { %697 = vsyncmov [#allocation3 + $0x3f] }
 0x240   :  { %s698_s24 = vpop.sfrf %697 }
 0x241   :  { %p1277_p4 = scmp.ne.s32.totalorder %s698_s24, 0 }
 0x243   :  { %702 = shalt.err (%p1277_p4)  }
 0x244   :  { %704 = vsyncmov [#allocation3 + $0x40] }
 0x247   :  { %s705_s25 = vpop.sfrf %704 }
 0x248   :  { %p1278_p7 = scmp.ne.s32.totalorder %s705_s25, 0 }
 0x24a   :  { %709 = shalt.err (%p1278_p7)  }
 0x24b   :  { %711 = vsyncmov [#allocation3 + $0x41] }
 0x24e   :  { %s712_s23 = vpop.sfrf %711 }
 0x24f   :  { %p1279_p6 = scmp.ne.s32.totalorder %s712_s23, 0 }
 0x251   :  { %716 = shalt.err (%p1279_p6)  }
 0x252   :  { %718 = vsyncmov [#allocation3 + $0x42] }
 0x255   :  { %s719_s1 = vpop.sfrf %718 }
 0x256   :  { %p1280_p8 = scmp.ne.s32.totalorder %s719_s1, 0 }
 0x258   :  { %723 = shalt.err (%p1280_p8)  }
 0x259   :  { %725 = vsyncmov [#allocation3 + $0x43] }
 0x25c   :  { %s726_s2 = vpop.sfrf %725 }
 0x25d   :  { %p1281_p9 = scmp.ne.s32.totalorder %s726_s2, 0 }
 0x25f   :  { %730 = shalt.err (%p1281_p9)  }
 0x260   :  { %732 = vsyncmov [#allocation3 + $0x44] }
 0x263   :  { %s733_s3 = vpop.sfrf %732 }
 0x264   :  { %p1282_p10 = scmp.ne.s32.totalorder %s733_s3, 0 }
 0x266   :  { %737 = shalt.err (%p1282_p10)  }
 0x267   :  { %739 = vsyncmov [#allocation3 + $0x45] }
 0x26a   :  { %s740_s15 = vpop.sfrf %739 }
 0x26b   :  { %p1283_p11 = scmp.ne.s32.totalorder %s740_s15, 0 }
 0x26d   :  { %744 = shalt.err (%p1283_p11)  }
 0x26e   :  { %746 = vsyncmov [#allocation3 + $0x46] }
 0x271   :  { %s747_s16 = vpop.sfrf %746 }
 0x272   :  { %p1284_p5 = scmp.ne.s32.totalorder %s747_s16, 0 }
 0x274   :  { %751 = shalt.err (%p1284_p5)  }
 0x275   :  { %753 = vsyncmov [#allocation3 + $0x47] }
 0x278   :  { %s754_s17 = vpop.sfrf %753 }
 0x279   :  { %p1285_p12 = scmp.ne.s32.totalorder %s754_s17, 0 }
 0x27b   :  { %758 = shalt.err (%p1285_p12)  }
 0x27c   :  { %760 = vsyncmov [#allocation3 + $0x48] }
 0x27f   :  { %s761_s20 = vpop.sfrf %760 }
 0x280   :  { %p1286_p13 = scmp.ne.s32.totalorder %s761_s20, 0 }
 0x282   :  { %765 = shalt.err (%p1286_p13)  }
 0x283   :  { %767 = vsyncmov [#allocation3 + $0x49] }
 0x286   :  { %s768_s8 = vpop.sfrf %767 }
 0x287   :  { %p1287_p0 = scmp.ne.s32.totalorder %s768_s8, 0 }
 0x289   :  { %772 = shalt.err (%p1287_p0)  }
 0x28a   :  { %774 = vsyncmov [#allocation3 + $0x4a] }
 0x28d   :  { %s775_s11 = vpop.sfrf %774 }
 0x28e   :  { %p1288_p1 = scmp.ne.s32.totalorder %s775_s11, 0 }
 0x290   :  { %779 = shalt.err (%p1288_p1)  }
 0x291   :  { %781 = vsyncmov [#allocation3 + $0x4b] }
 0x294   :  { %s782_s0 = vpop.sfrf %781 }
 0x295   :  { %p1289_p2 = scmp.ne.s32.totalorder %s782_s0, 0 }
 0x297   :  { %786 = shalt.err (%p1289_p2)  }
 0x298   :  { %788 = vsyncmov [#allocation3 + $0x4c] }
 0x29b   :  { %s789_s19 = vpop.sfrf %788 }
 0x29c   :  { %p1290_p3 = scmp.ne.s32.totalorder %s789_s19, 0 }
 0x29e   :  { %793 = shalt.err (%p1290_p3)  }
 0x29f   :  { %795 = vsyncmov [#allocation3 + $0x4d] }
 0x2a2   :  { %s796_s27 = vpop.sfrf %795 }
 0x2a3   :  { %p1291_p4 = scmp.ne.s32.totalorder %s796_s27, 0 }
 0x2a5   :  { %800 = shalt.err (%p1291_p4)  }
 0x2a6   :  { %802 = vsyncmov [#allocation3 + $0x4e] }
 0x2a9   :  { %s803_s28 = vpop.sfrf %802 }
 0x2aa   :  { %p1292_p7 = scmp.ne.s32.totalorder %s803_s28, 0 }
 0x2ac   :  { %807 = shalt.err (%p1292_p7)  }
 0x2ad   :  { %809 = vsyncmov [#allocation3 + $0x4f] }
 0x2b0   :  { %s810_s29 = vpop.sfrf %809 }
 0x2b1   :  { %p1293_p6 = scmp.ne.s32.totalorder %s810_s29, 0 }
 0x2b3   :  { %814 = shalt.err (%p1293_p6)  }
 0x2b4   :  { %816 = vsyncmov [#allocation3 + $0x50] }
 0x2b7   :  { %s817_s30 = vpop.sfrf %816 }
 0x2b8   :  { %p1294_p8 = scmp.ne.s32.totalorder %s817_s30, 0 }
 0x2ba   :  { %821 = shalt.err (%p1294_p8)  }
 0x2bb   :  { %823 = vsyncmov [#allocation3 + $0x51] }
 0x2be   :  { %s824_s4 = vpop.sfrf %823 }
 0x2bf   :  { %p1295_p9 = scmp.ne.s32.totalorder %s824_s4, 0 }
 0x2c1   :  { %828 = shalt.err (%p1295_p9)  }
 0x2c2   :  { %830 = vsyncmov [#allocation3 + $0x52] }
 0x2c5   :  { %s831_s5 = vpop.sfrf %830 }
 0x2c6   :  { %p1296_p10 = scmp.ne.s32.totalorder %s831_s5, 0 }
 0x2c8   :  { %835 = shalt.err (%p1296_p10)  }
 0x2c9   :  { %837 = vsyncmov [#allocation3 + $0x53] }
 0x2cc   :  { %s838_s7 = vpop.sfrf %837 }
 0x2cd   :  { %p1297_p11 = scmp.ne.s32.totalorder %s838_s7, 0 }
 0x2cf   :  { %842 = shalt.err (%p1297_p11)  }
 0x2d0   :  { %844 = vsyncmov [#allocation3 + $0x54] }
 0x2d3   :  { %s845_s10 = vpop.sfrf %844 }
 0x2d4   :  { %p1298_p5 = scmp.ne.s32.totalorder %s845_s10, 0 }
 0x2d6   :  { %849 = shalt.err (%p1298_p5)  }
 0x2d7   :  { %851 = vsyncmov [#allocation3 + $0x55] }
 0x2da   :  { %s852_s6 = vpop.sfrf %851 }
 0x2db   :  { %p1299_p12 = scmp.ne.s32.totalorder %s852_s6, 0 }
 0x2dd   :  { %856 = shalt.err (%p1299_p12)  }
 0x2de   :  { %858 = vsyncmov [#allocation3 + $0x56] }
 0x2e1   :  { %s859_s9 = vpop.sfrf %858 }
 0x2e2   :  { %p1300_p13 = scmp.ne.s32.totalorder %s859_s9, 0 }
 0x2e4   :  { %863 = shalt.err (%p1300_p13)  }
 0x2e5   :  { %865 = vsyncmov [#allocation3 + $0x57] }
 0x2e8   :  { %s866_s12 = vpop.sfrf %865 }
 0x2e9   :  { %p1301_p0 = scmp.ne.s32.totalorder %s866_s12, 0 }
 0x2eb   :  { %870 = shalt.err (%p1301_p0)  }
 0x2ec   :  { %872 = vsyncmov [#allocation3 + $0x58] }
 0x2ef   :  { %s873_s13 = vpop.sfrf %872 }
 0x2f0   :  { %p1302_p1 = scmp.ne.s32.totalorder %s873_s13, 0 }
 0x2f2   :  { %877 = shalt.err (%p1302_p1)  }
 0x2f3   :  { %879 = vsyncmov [#allocation3 + $0x59] }
 0x2f6   :  { %s880_s14 = vpop.sfrf %879 }
 0x2f7   :  { %p1303_p2 = scmp.ne.s32.totalorder %s880_s14, 0 }
 0x2f9   :  { %884 = shalt.err (%p1303_p2)  }
 0x2fa   :  { %886 = vsyncmov [#allocation3 + $0x5a] }
 0x2fd   :  { %s887_s21 = vpop.sfrf %886 }
 0x2fe   :  { %p1304_p3 = scmp.ne.s32.totalorder %s887_s21, 0 }
 0x300   :  { %891 = shalt.err (%p1304_p3)  }
 0x301   :  { %893 = vsyncmov [#allocation3 + $0x5b] }
 0x304   :  { %s894_s22 = vpop.sfrf %893 }
 0x305   :  { %p1305_p4 = scmp.ne.s32.totalorder %s894_s22, 0 }
 0x307   :  { %898 = shalt.err (%p1305_p4)  }
 0x308   :  { %900 = vsyncmov [#allocation3 + $0x5c] }
 0x30b   :  { %s901_s26 = vpop.sfrf %900 }
 0x30c   :  { %p1306_p7 = scmp.ne.s32.totalorder %s901_s26, 0 }
 0x30e   :  { %905 = shalt.err (%p1306_p7)  }
 0x30f   :  { %907 = vsyncmov [#allocation3 + $0x5d] }
 0x312   :  { %s908_s18 = vpop.sfrf %907 }
 0x313   :  { %p1307_p6 = scmp.ne.s32.totalorder %s908_s18, 0 }
 0x315   :  { %912 = shalt.err (%p1307_p6)  }
 0x316   :  { %914 = vsyncmov [#allocation3 + $0x5e] }
 0x319   :  { %s915_s24 = vpop.sfrf %914 }
 0x31a   :  { %p1308_p8 = scmp.ne.s32.totalorder %s915_s24, 0 }
 0x31c   :  { %919 = shalt.err (%p1308_p8)  }
 0x31d   :  { %921 = vsyncmov [#allocation3 + $0x5f] }
 0x320   :  { %s922_s25 = vpop.sfrf %921 }
 0x321   :  { %p1309_p9 = scmp.ne.s32.totalorder %s922_s25, 0 }
 0x323   :  { %926 = shalt.err (%p1309_p9)  }
 0x324   :  { %928 = vsyncmov [#allocation3 + $0x60] }
 0x327   :  { %s929_s23 = vpop.sfrf %928 }
 0x328   :  { %p1310_p10 = scmp.ne.s32.totalorder %s929_s23, 0 }
 0x32a   :  { %933 = shalt.err (%p1310_p10)  }
 0x32b   :  { %935 = vsyncmov [#allocation3 + $0x61] }
 0x32e   :  { %s936_s1 = vpop.sfrf %935 }
 0x32f   :  { %p1311_p11 = scmp.ne.s32.totalorder %s936_s1, 0 }
 0x331   :  { %940 = shalt.err (%p1311_p11)  }
 0x332   :  { %942 = vsyncmov [#allocation3 + $0x62] }
 0x335   :  { %s943_s2 = vpop.sfrf %942 }
 0x336   :  { %p1312_p5 = scmp.ne.s32.totalorder %s943_s2, 0 }
 0x338   :  { %947 = shalt.err (%p1312_p5)  }
 0x339   :  { %949 = vsyncmov [#allocation3 + $0x63] }
 0x33c   :  { %s950_s3 = vpop.sfrf %949 }
 0x33d   :  { %p1313_p12 = scmp.ne.s32.totalorder %s950_s3, 0 }
 0x33f   :  { %954 = shalt.err (%p1313_p12)  }
 0x340   :  { %956 = vsyncmov [#allocation3 + $0x64] }
 0x343   :  { %s957_s15 = vpop.sfrf %956 }
 0x344   :  { %p1314_p13 = scmp.ne.s32.totalorder %s957_s15, 0 }
 0x346   :  { %961 = shalt.err (%p1314_p13)  }
 0x347   :  { %963 = vsyncmov [#allocation3 + $0x65] }
 0x34a   :  { %s964_s16 = vpop.sfrf %963 }
 0x34b   :  { %p1315_p0 = scmp.ne.s32.totalorder %s964_s16, 0 }
 0x34d   :  { %968 = shalt.err (%p1315_p0)  }
 0x34e   :  { %970 = vsyncmov [#allocation3 + $0x66] }
 0x351   :  { %s971_s17 = vpop.sfrf %970 }
 0x352   :  { %p1316_p1 = scmp.ne.s32.totalorder %s971_s17, 0 }
 0x354   :  { %975 = shalt.err (%p1316_p1)  }
 0x355   :  { %977 = vsyncmov [#allocation3 + $0x67] }
 0x358   :  { %s978_s20 = vpop.sfrf %977 }
 0x359   :  { %p1317_p2 = scmp.ne.s32.totalorder %s978_s20, 0 }
 0x35b   :  { %982 = shalt.err (%p1317_p2)  }
 0x35c   :  { %984 = vsyncmov [#allocation3 + $0x68] }
 0x35f   :  { %s985_s8 = vpop.sfrf %984 }
 0x360   :  { %p1318_p3 = scmp.ne.s32.totalorder %s985_s8, 0 }
 0x362   :  { %989 = shalt.err (%p1318_p3)  }
 0x363   :  { %991 = vsyncmov [#allocation3 + $0x69] }
 0x366   :  { %s992_s11 = vpop.sfrf %991 }
 0x367   :  { %p1319_p4 = scmp.ne.s32.totalorder %s992_s11, 0 }
 0x369   :  { %996 = shalt.err (%p1319_p4)  }
 0x36a   :  { %998 = vsyncmov [#allocation3 + $0x6a] }
 0x36d   :  { %s999_s0 = vpop.sfrf %998 }
 0x36e   :  { %p1320_p7 = scmp.ne.s32.totalorder %s999_s0, 0 }
 0x370   :  { %1003 = shalt.err (%p1320_p7)  }
 0x371   :  { %1005 = vsyncmov [#allocation3 + $0x6b] }
 0x374   :  { %s1006_s19 = vpop.sfrf %1005 }
 0x375   :  { %p1321_p6 = scmp.ne.s32.totalorder %s1006_s19, 0 }
 0x377   :  { %1010 = shalt.err (%p1321_p6)  }
 0x378   :  { %1012 = vsyncmov [#allocation3 + $0x6c] }
 0x37b   :  { %s1013_s27 = vpop.sfrf %1012 }
 0x37c   :  { %p1322_p8 = scmp.ne.s32.totalorder %s1013_s27, 0 }
 0x37e   :  { %1017 = shalt.err (%p1322_p8)  }
 0x37f   :  { %1019 = vsyncmov [#allocation3 + $0x6d] }
 0x382   :  { %s1020_s28 = vpop.sfrf %1019 }
 0x383   :  { %p1323_p9 = scmp.ne.s32.totalorder %s1020_s28, 0 }
 0x385   :  { %1024 = shalt.err (%p1323_p9)  }
 0x386   :  { %1026 = vsyncmov [#allocation3 + $0x6e] }
 0x389   :  { %s1027_s29 = vpop.sfrf %1026 }
 0x38a   :  { %p1324_p10 = scmp.ne.s32.totalorder %s1027_s29, 0 }
 0x38c   :  { %1031 = shalt.err (%p1324_p10)  }
 0x38d   :  { %1033 = vsyncmov [#allocation3 + $0x6f] }
 0x390   :  { %s1034_s30 = vpop.sfrf %1033 }
 0x391   :  { %p1325_p11 = scmp.ne.s32.totalorder %s1034_s30, 0 }
 0x393   :  { %1038 = shalt.err (%p1325_p11)  }
 0x394   :  { %1040 = vsyncmov [#allocation3 + $0x70] }
 0x397   :  { %s1041_s4 = vpop.sfrf %1040 }
 0x398   :  { %p1326_p5 = scmp.ne.s32.totalorder %s1041_s4, 0 }
 0x39a   :  { %1045 = shalt.err (%p1326_p5)  }
 0x39b   :  { %1047 = vsyncmov [#allocation3 + $0x71] }
 0x39e   :  { %s1048_s5 = vpop.sfrf %1047 }
 0x39f   :  { %p1327_p12 = scmp.ne.s32.totalorder %s1048_s5, 0 }
 0x3a1   :  { %1052 = shalt.err (%p1327_p12)  }
 0x3a2   :  { %1054 = vsyncmov [#allocation3 + $0x72] }
 0x3a5   :  { %s1055_s7 = vpop.sfrf %1054 }
 0x3a6   :  { %p1328_p13 = scmp.ne.s32.totalorder %s1055_s7, 0 }
 0x3a8   :  { %1059 = shalt.err (%p1328_p13)  }
 0x3a9   :  { %1061 = vsyncmov [#allocation3 + $0x73] }
 0x3ac   :  { %s1062_s10 = vpop.sfrf %1061 }
 0x3ad   :  { %p1329_p0 = scmp.ne.s32.totalorder %s1062_s10, 0 }
 0x3af   :  { %1066 = shalt.err (%p1329_p0)  }
 0x3b0   :  { %1068 = vsyncmov [#allocation3 + $0x74] }
 0x3b3   :  { %s1069_s6 = vpop.sfrf %1068 }
 0x3b4   :  { %p1330_p1 = scmp.ne.s32.totalorder %s1069_s6, 0 }
 0x3b6   :  { %1073 = shalt.err (%p1330_p1)  }
 0x3b7   :  { %1075 = vsyncmov [#allocation3 + $0x75] }
 0x3ba   :  { %s1076_s9 = vpop.sfrf %1075 }
 0x3bb   :  { %p1331_p2 = scmp.ne.s32.totalorder %s1076_s9, 0 }
 0x3bd   :  { %1080 = shalt.err (%p1331_p2)  }
 0x3be   :  { %1082 = vsyncmov [#allocation3 + $0x76] }
 0x3c1   :  { %s1083_s12 = vpop.sfrf %1082 }
 0x3c2   :  { %p1332_p3 = scmp.ne.s32.totalorder %s1083_s12, 0 }
 0x3c4   :  { %1087 = shalt.err (%p1332_p3)  }
 0x3c5   :  { %1089 = vsyncmov [#allocation3 + $0x77] }
 0x3c8   :  { %s1090_s13 = vpop.sfrf %1089 }
 0x3c9   :  { %p1333_p4 = scmp.ne.s32.totalorder %s1090_s13, 0 }
 0x3cb   :  { %1094 = shalt.err (%p1333_p4)  }
 0x3cc   :  { %1096 = vsyncmov [#allocation3 + $0x78] }
 0x3cf   :  { %s1097_s14 = vpop.sfrf %1096 }
 0x3d0   :  { %p1334_p7 = scmp.ne.s32.totalorder %s1097_s14, 0 }
 0x3d2   :  { %1101 = shalt.err (%p1334_p7)  }
 0x3d3   :  { %1103 = vsyncmov [#allocation3 + $0x79] }
 0x3d6   :  { %s1104_s21 = vpop.sfrf %1103 }
 0x3d7   :  { %p1335_p6 = scmp.ne.s32.totalorder %s1104_s21, 0 }
 0x3d9   :  { %1108 = shalt.err (%p1335_p6)  }
 0x3da   :  { %1110 = vsyncmov [#allocation3 + $0x7a] }
 0x3dd   :  { %s1111_s22 = vpop.sfrf %1110 }
 0x3de   :  { %p1336_p8 = scmp.ne.s32.totalorder %s1111_s22, 0 }
 0x3e0   :  { %1115 = shalt.err (%p1336_p8)  }
 0x3e1   :  { %1117 = vsyncmov [#allocation3 + $0x7b] }
 0x3e4   :  { %s1118_s26 = vpop.sfrf %1117 }
 0x3e5   :  { %p1337_p9 = scmp.ne.s32.totalorder %s1118_s26, 0 }
 0x3e7   :  { %1122 = shalt.err (%p1337_p9)  }
 0x3e8   :  { %1124 = vsyncmov [#allocation3 + $0x7c] }
 0x3eb   :  { %s1125_s18 = vpop.sfrf %1124 }
 0x3ec   :  { %p1338_p10 = scmp.ne.s32.totalorder %s1125_s18, 0 }
 0x3ee   :  { %1129 = shalt.err (%p1338_p10)  }
 0x3ef   :  { %1131 = vsyncmov [#allocation3 + $0x7d] }
 0x3f2   :  { %s1132_s24 = vpop.sfrf %1131 }
 0x3f3   :  { %p1339_p11 = scmp.ne.s32.totalorder %s1132_s24, 0 }
 0x3f5   :  { %1136 = shalt.err (%p1339_p11)  }
 0x3f6   :  { %1138 = vsyncmov [#allocation3 + $0x7e] }
 0x3f9   :  { %s1139_s25 = vpop.sfrf %1138 }
 0x3fa   :  { %p1340_p5 = scmp.ne.s32.totalorder %s1139_s25, 0 }
 0x3fc   :  { %1143 = shalt.err (%p1340_p5)  }
 0x3fd   :  { %1145 = vsyncmov [#allocation3 + $0x7f] }
 0x400   :  { %s1146_s23 = vpop.sfrf %1145 }
 0x401   :  { %p1341_p12 = scmp.ne.s32.totalorder %s1146_s23, 0 }
 0x403   :  { %1150 = shalt.err (%p1341_p12)  }

</bundles_post_ra>
